<compile_context>
chip_gen: v7x
topology: tpu7x:2x2x1
jax: 0.10.0
libtpu: 0.0.40
codegen_flags: <defaults>
</compile_context>

<pallas_src>
import jax
import jax.numpy as jnp
from jax.experimental import pallas as pl
from jax.experimental.pallas import tpu as pltpu

# Layer widths: in_features=128, num_cells=[64, 32, 16, 8], out_features=8
DIMS = [128, 64, 32, 16, 8, 8]
NUM_LAYERS = len(DIMS) - 1       # 5 Linear layers
PAD = 128                        # every layer padded to 128 wide (lane/MXU friendly)
OUT_DIM = DIMS[-1]


def _round_up(x, m):
    return (x + m - 1) // m * m


def mlp_kernel(x_ref, w_ref, b_ref, o_ref):
    """Whole-MLP hot path: 5 chained (tm,128)@(128,128) MXU matmuls in VMEM.

    Weights are zero-padded to 128x128 and biases to 128 lanes, so the padded
    lanes stay exactly 0 through every layer; the true result is the first
    OUT_DIM lanes of the final activation (sliced in the wrapper).
    """
    w_dtype = w_ref.dtype
    h = x_ref[...]                                      # (tm, 128), compute dtype
    for li in range(NUM_LAYERS):
        w = w_ref[li]                                   # (128, 128), static index
        h = jnp.dot(h.astype(w_dtype), w,
                    preferred_element_type=jnp.float32)  # f32 accumulation
        h = h + b_ref[li:li + 1, :]                     # (1,128) f32 bias broadcast
        if li < NUM_LAYERS - 1:
            h = jnp.maximum(h, 0.0)                     # ReLU on hidden layers only
    # Lane-dense (tm, 128) unmasked store; lanes [OUT_DIM:] are exactly zero.
    o_ref[...] = h.astype(o_ref.dtype)


def pack_params(params, compute_dtype):
    """Zero-pad each layer to (128,128)/(128,) and stack into two resident slabs."""
    w_slab = jnp.zeros((NUM_LAYERS, PAD, PAD), compute_dtype)
    b_slab = jnp.zeros((NUM_LAYERS, PAD), jnp.float32)
    for li, (w, b) in enumerate(params):
        w_slab = w_slab.at[li, :w.shape[0], :w.shape[1]].set(w.astype(compute_dtype))
        b_slab = b_slab.at[li, :b.shape[0]].set(b.astype(jnp.float32))
    return w_slab, b_slab


def mlp_reference(x, params):
    h = x
    for li, (w, b) in enumerate(params):
        h = h @ w + b
        if li < NUM_LAYERS - 1:
            h = jnp.maximum(h, 0.0)
    return h


def _choose_tm(n_rows, tm):
    """Row-tile selection: explicit tm is honored (8-aligned, clamped);
    otherwise target >=8 grid steps (>=4 per TensorCore on v7x megacore),
    tile capped at 2048 rows (VMEM footprint is ~MBs, far under any limit)."""
    if tm is not None:
        return _round_up(max(8, min(tm, _round_up(n_rows, 8))), 8)
    target_steps = 8
    t = _round_up(pl.cdiv(n_rows, target_steps), 128)
    return max(128, min(2048, t))


def mlp_forward(x, params, *, tm=None, compute_dtype=jnp.bfloat16,
                min_pallas_rows=256):
    """x: (N, 128). params: list of (W:(in,out), b:(out,)). Returns (N, 8) float32."""
    N, D = x.shape
    assert D == DIMS[0]

    # Tiny problems: XLA fusion beats kernel launch + pipeline prologue.
    if N < min_pallas_rows:
        return mlp_reference(x.astype(jnp.float32), params)

    w_slab, b_slab = pack_params(params, compute_dtype)

    tm = _choose_tm(N, tm)
    n_pad = _round_up(N, tm)
    x_in = x.astype(compute_dtype)
    if n_pad != N:
        x_in = jnp.pad(x_in, ((0, n_pad - N), (0, 0)))

    grid = (n_pad // tm,)

    in_specs = [
        pl.BlockSpec((tm, D), lambda i: (i, 0)),                    # stream rows of x
        pl.BlockSpec((NUM_LAYERS, PAD, PAD), lambda i: (0, 0, 0)),  # resident weights
        pl.BlockSpec((NUM_LAYERS, PAD), lambda i: (0, 0)),          # resident biases
    ]
    # Lane-dense output block (tm, 128): unmasked full-lane stores.
    out_specs = pl.BlockSpec((tm, PAD), lambda i: (i, 0))

    # Advisory cost: report the padded MXU work actually issued.
    cost = pl.CostEstimate(
        flops=n_pad * NUM_LAYERS * 2 * PAD * PAD,
        transcendentals=0,
        bytes_accessed=(int(x_in.size) * x_in.dtype.itemsize
                        + n_pad * PAD * 4
                        + int(w_slab.size) * w_slab.dtype.itemsize
                        + int(b_slab.size) * 4),
    )

    out = pl.pallas_call(
        mlp_kernel,
        out_shape=jax.ShapeDtypeStruct((n_pad, PAD), jnp.float32),
        grid_spec=pltpu.PrefetchScalarGridSpec(
            num_scalar_prefetch=0,
            grid=grid,
            in_specs=in_specs,
            out_specs=out_specs,
        ),
        compiler_params=pltpu.CompilerParams(
            dimension_semantics=("parallel",)),
        cost_estimate=cost,
    )(x_in, w_slab, b_slab)

    return out[:N, :OUT_DIM]


def init_params(key):
    """Deterministic init matching PyTorch nn.Linear defaults: U(+-1/sqrt(fan_in))."""
    params = []
    keys = jax.random.split(key, 2 * NUM_LAYERS)
    for li in range(NUM_LAYERS):
        fan_in, fan_out = DIMS[li], DIMS[li + 1]
        bound = 1.0 / float(fan_in) ** 0.5
        w = jax.random.uniform(keys[2 * li], (fan_in, fan_out), jnp.float32,
                               minval=-bound, maxval=bound)
        b = jax.random.uniform(keys[2 * li + 1], (fan_out,), jnp.float32,
                               minval=-bound, maxval=bound)
        params.append((w, b))
    return params


if __name__ == "__main__":
    root = jax.random.PRNGKey(0)
    pkey, xkey = jax.random.split(root)

    params = init_params(pkey)

    # A realistic-but-small descriptor batch: 1024 SuperPoint descriptors of dim 128.
    N = 1024
    x = jax.random.normal(xkey, (N, 128), jnp.float32)

    ref = mlp_reference(x, params)

    # Exact f32 path (bit-level module semantics).
    out_f32 = jax.block_until_ready(mlp_forward(x, params, compute_dtype=jnp.float32))
    assert out_f32.shape == (N, OUT_DIM)
    assert jnp.allclose(out_f32, ref, atol=1e-4, rtol=1e-4), "f32 kernel mismatch vs reference"

    # Default bf16 path (f32 accumulation; inference-grade accuracy).
    out_bf16 = jax.block_until_ready(mlp_forward(x, params))
    assert out_bf16.shape == (N, OUT_DIM)
    assert jnp.allclose(out_bf16, ref, atol=1e-1, rtol=1e-1), "bf16 kernel mismatch vs reference"

    # Tiny-N inputs dispatch to the plain XLA path (kernel launch not worth it).
    out_small = jax.block_until_ready(mlp_forward(x[:16], params))
    assert out_small.shape == (16, OUT_DIM)
    assert jnp.allclose(out_small, ref[:16], atol=1e-5, rtol=1e-5), "small-N fallback mismatch"

    print("KERNEL_OK")
</pallas_src>

<mosaic_0001>
module attributes {stable_mosaic.version = 11 : i64} {
  func.func @mlp_kernel(%arg0: i32, %arg1: memref<128x128xf32, #tpu.memory_space<vmem>>, %arg2: memref<5x128x128xf32, #tpu.memory_space<vmem>>, %arg3: memref<5x128xf32, #tpu.memory_space<vmem>>, %arg4: memref<128x128xf32, #tpu.memory_space<vmem>>) attributes {dimension_semantics = [#tpu.dimension_semantics<parallel>], iteration_bounds = array<i64: 8>, scalar_prefetch = 0 : i64, scratch_operands = 0 : i64, tpu.core_type = #tpu.core_type<tc>, window_params = [{transform_indices = @transform_0, window_bounds = array<i64: 128, 128>}, {pipeline_mode = #tpu.pipeline_mode<synchronous>, transform_indices = @transform_1, window_bounds = array<i64: 5, 128, 128>}, {pipeline_mode = #tpu.pipeline_mode<synchronous>, transform_indices = @transform_2, window_bounds = array<i64: 5, 128>}, {transform_indices = @transform_3, window_bounds = array<i64: 128, 128>}]} {
    %c0 = arith.constant 0 : index
    %c0_0 = arith.constant 0 : index
    %0 = vector.load %arg1[%c0, %c0_0] : memref<128x128xf32, #tpu.memory_space<vmem>>, vector<128x128xf32>
    %c0_1 = arith.constant 0 : index
    %c0_2 = arith.constant 0 : index
    %c0_3 = arith.constant 0 : index
    %1 = vector.load %arg2[%c0_1, %c0_2, %c0_3] : memref<5x128x128xf32, #tpu.memory_space<vmem>>, vector<1x128x128xf32>
    %2 = vector.shape_cast %1 : vector<1x128x128xf32> to vector<128x128xf32>
    %cst = arith.constant dense<0.000000e+00> : vector<128x128xf32>
    %3 = tpu.matmul %0, %2, %cst {dimension_numbers = #tpu.dot_dimension_numbers<[1], [0], [0], [1], [0, 0, 1, 1], [], []>} : vector<128x128xf32>, vector<128x128xf32>, vector<128x128xf32> -> vector<128x128xf32>
    %c0_4 = arith.constant 0 : index
    %c0_5 = arith.constant 0 : index
    %4 = vector.load %arg3[%c0_4, %c0_5] : memref<5x128xf32, #tpu.memory_space<vmem>>, vector<1x128xf32>
    %5 = vector.broadcast %4 : vector<1x128xf32> to vector<128x128xf32>
    %6 = arith.addf %3, %5 : vector<128x128xf32>
    %cst_6 = arith.constant 0.000000e+00 : f32
    %7 = vector.broadcast %cst_6 : f32 to vector<128x128xf32>
    %8 = arith.maximumf %6, %7 : vector<128x128xf32>
    %c1 = arith.constant 1 : index
    %c0_7 = arith.constant 0 : index
    %c0_8 = arith.constant 0 : index
    %9 = vector.load %arg2[%c1, %c0_7, %c0_8] : memref<5x128x128xf32, #tpu.memory_space<vmem>>, vector<1x128x128xf32>
    %10 = vector.shape_cast %9 : vector<1x128x128xf32> to vector<128x128xf32>
    %cst_9 = arith.constant dense<0.000000e+00> : vector<128x128xf32>
    %11 = tpu.matmul %8, %10, %cst_9 {dimension_numbers = #tpu.dot_dimension_numbers<[1], [0], [0], [1], [0, 0, 1, 1], [], []>} : vector<128x128xf32>, vector<128x128xf32>, vector<128x128xf32> -> vector<128x128xf32>
    %c1_10 = arith.constant 1 : index
    %c0_11 = arith.constant 0 : index
    %12 = vector.load %arg3[%c1_10, %c0_11] : memref<5x128xf32, #tpu.memory_space<vmem>>, vector<1x128xf32>
    %13 = vector.broadcast %12 : vector<1x128xf32> to vector<128x128xf32>
    %14 = arith.addf %11, %13 : vector<128x128xf32>
    %cst_12 = arith.constant 0.000000e+00 : f32
    %15 = vector.broadcast %cst_12 : f32 to vector<128x128xf32>
    %16 = arith.maximumf %14, %15 : vector<128x128xf32>
    %c2 = arith.constant 2 : index
    %c0_13 = arith.constant 0 : index
    %c0_14 = arith.constant 0 : index
    %17 = vector.load %arg2[%c2, %c0_13, %c0_14] : memref<5x128x128xf32, #tpu.memory_space<vmem>>, vector<1x128x128xf32>
    %18 = vector.shape_cast %17 : vector<1x128x128xf32> to vector<128x128xf32>
    %cst_15 = arith.constant dense<0.000000e+00> : vector<128x128xf32>
    %19 = tpu.matmul %16, %18, %cst_15 {dimension_numbers = #tpu.dot_dimension_numbers<[1], [0], [0], [1], [0, 0, 1, 1], [], []>} : vector<128x128xf32>, vector<128x128xf32>, vector<128x128xf32> -> vector<128x128xf32>
    %c2_16 = arith.constant 2 : index
    %c0_17 = arith.constant 0 : index
    %20 = vector.load %arg3[%c2_16, %c0_17] : memref<5x128xf32, #tpu.memory_space<vmem>>, vector<1x128xf32>
    %21 = vector.broadcast %20 : vector<1x128xf32> to vector<128x128xf32>
    %22 = arith.addf %19, %21 : vector<128x128xf32>
    %cst_18 = arith.constant 0.000000e+00 : f32
    %23 = vector.broadcast %cst_18 : f32 to vector<128x128xf32>
    %24 = arith.maximumf %22, %23 : vector<128x128xf32>
    %c3 = arith.constant 3 : index
    %c0_19 = arith.constant 0 : index
    %c0_20 = arith.constant 0 : index
    %25 = vector.load %arg2[%c3, %c0_19, %c0_20] : memref<5x128x128xf32, #tpu.memory_space<vmem>>, vector<1x128x128xf32>
    %26 = vector.shape_cast %25 : vector<1x128x128xf32> to vector<128x128xf32>
    %cst_21 = arith.constant dense<0.000000e+00> : vector<128x128xf32>
    %27 = tpu.matmul %24, %26, %cst_21 {dimension_numbers = #tpu.dot_dimension_numbers<[1], [0], [0], [1], [0, 0, 1, 1], [], []>} : vector<128x128xf32>, vector<128x128xf32>, vector<128x128xf32> -> vector<128x128xf32>
    %c3_22 = arith.constant 3 : index
    %c0_23 = arith.constant 0 : index
    %28 = vector.load %arg3[%c3_22, %c0_23] : memref<5x128xf32, #tpu.memory_space<vmem>>, vector<1x128xf32>
    %29 = vector.broadcast %28 : vector<1x128xf32> to vector<128x128xf32>
    %30 = arith.addf %27, %29 : vector<128x128xf32>
    %cst_24 = arith.constant 0.000000e+00 : f32
    %31 = vector.broadcast %cst_24 : f32 to vector<128x128xf32>
    %32 = arith.maximumf %30, %31 : vector<128x128xf32>
    %c4 = arith.constant 4 : index
    %c0_25 = arith.constant 0 : index
    %c0_26 = arith.constant 0 : index
    %33 = vector.load %arg2[%c4, %c0_25, %c0_26] : memref<5x128x128xf32, #tpu.memory_space<vmem>>, vector<1x128x128xf32>
    %34 = vector.shape_cast %33 : vector<1x128x128xf32> to vector<128x128xf32>
    %cst_27 = arith.constant dense<0.000000e+00> : vector<128x128xf32>
    %35 = tpu.matmul %32, %34, %cst_27 {dimension_numbers = #tpu.dot_dimension_numbers<[1], [0], [0], [1], [0, 0, 1, 1], [], []>} : vector<128x128xf32>, vector<128x128xf32>, vector<128x128xf32> -> vector<128x128xf32>
    %c4_28 = arith.constant 4 : index
    %c0_29 = arith.constant 0 : index
    %36 = vector.load %arg3[%c4_28, %c0_29] : memref<5x128xf32, #tpu.memory_space<vmem>>, vector<1x128xf32>
    %37 = vector.broadcast %36 : vector<1x128xf32> to vector<128x128xf32>
    %38 = arith.addf %35, %37 : vector<128x128xf32>
    %c0_30 = arith.constant 0 : index
    %c0_31 = arith.constant 0 : index
    %39 = vector.load %arg4[%c0_30, %c0_31] : memref<128x128xf32, #tpu.memory_space<vmem>>, vector<128x128xf32>
    tpu.vector_store %arg4[%c0_30, %c0_31], %38 {strides = array<i32>} : memref<128x128xf32, #tpu.memory_space<vmem>>, vector<128x128xf32>,
    return
  }
  func.func @transform_0(%arg0: i32) -> (i32, i32) {
    %c0_i32 = arith.constant 0 : i32
    %c0_i32_0 = arith.constant 0 : i32
    return %arg0, %c0_i32 : i32, i32
  }
  func.func @transform_1(%arg0: i32) -> (i32, i32, i32) {
    %c0_i32 = arith.constant 0 : i32
    %c0_i32_0 = arith.constant 0 : i32
    %c0_i32_1 = arith.constant 0 : i32
    %c0_i32_2 = arith.constant 0 : i32
    return %c0_i32, %c0_i32_0, %c0_i32_1 : i32, i32, i32
  }
  func.func @transform_2(%arg0: i32) -> (i32, i32) {
    %c0_i32 = arith.constant 0 : i32
    %c0_i32_0 = arith.constant 0 : i32
    %c0_i32_1 = arith.constant 0 : i32
    return %c0_i32, %c0_i32_0 : i32, i32
  }
  func.func @transform_3(%arg0: i32) -> (i32, i32) {
    %c0_i32 = arith.constant 0 : i32
    %c0_i32_0 = arith.constant 0 : i32
    return %arg0, %c0_i32 : i32, i32
  }
}

</mosaic_0001>

<bundles_post_ra>
// kernel: tpu_custom_call.1
= control target key start
LH: loop header
LB: loop body
LE: loop exit
PB: predicated region body
PF: predicated region fallthrough
CT: control target
= control target key end

     0   :  { %8 = vsyncpa [#allocation3], 0  ;;  %s2466_s0 = inlined_call_operand.hbm [shape: f32[1024,128], index: 0, kind: input, shape index: {}]   ;;  %s2467_s1 = inlined_call_operand.hbm [shape: f32[5,128,128], index: 1, kind: input, shape index: {}]   ;;  %s2468_s2 = inlined_call_operand.hbm [shape: f32[5,128], index: 2, kind: input, shape index: {}]   ;;  %s2469_s3 = inlined_call_operand.hbm [shape: f32[1024,128], index: 3, kind: output, shape index: {}]  }
   0x1   :  { %10 = vsyncpa [#allocation3 + $0x1], 0 }
   0x2   :  { %11 = vsyncpa [#allocation6], 0 }
   0x3   :  { %12 = vsyncpa [#allocation4], 0 }
   0x4   :  { %14 = vsyncpa [#allocation4 + $0x1], 0  ;;  %s2152_s12 = smov 0   ;;  %s2154_s13 = smov 0  }
   0x5   :  { %s2156_s14 = smov 0   ;;  %s2158_s15 = smov 0  }
   0x6 LB: > { %s2173_s16 = sadd.s32 4294967295, %s2122_s15   ;;  %s1254_s17 = sadd.s32 4294967294, %s2122_s15   ;;  %s2122_s15 = sphi %s2158_s15, %s2488_s15   ;;  %s2118_s14 = sphi %s2156_s14, %s2487_s14   ;;  %s2114_s13 = sphi %s2154_s13, %s2486_s13   ;;  %s2110_s12 = sphi %s2152_s12, %s2485_s12  }
   0x7   : > { %p40_p0 = scmp.ne.s32.totalorder %s2114_s13, %s2110_s12  ;;  %p2470_p1 = scmp.eq.s32.totalorder %s2173_s16, 0 }
   0x8   : > { %p112_p3 = scmp.eq.s32.totalorder %s1254_s17, 7  ;;  %p1255_p5 = scmp.ge.s32.totalorder %s2122_s15, 1 }
   0x9   : > { %p2182_p4 = por %p2470_p1, %p40_p0  ;;  %p119_p7 = scmp.lt.s32.totalorder %s2122_s15, 9 }
   0xa   : > { %p2187_p6 = por %p112_p3, %p40_p0  ;;  %s2124_s21 = smov [#allocation5]  }
   0xb   : > { %s2473_s18 = scalar_select %p2182_p4, 1, 0 }
   0xc   : > { %s2474_s19 = scalar_select %p2187_p6, 1, 0 }
   0xd   : > { %p2192_p8 = pnand %p1255_p5, %p119_p7  ;;  %s131_s22 = sshll.u32 %s2124_s21, 4  ;;  %s132_s22 = int_to_ptr.vmem [resolvable:$true] %s131_s22 }
   0xe   : > { %s2125_s24 = smov [#allocation7]   ;;  %s1966_s28 = scalar_lea.hbm %s2467_s1, 10240 }
   0xf   : > { %s2475_s20 = scalar_select %p2192_p8, 1, 0 }
  0x10   : > { %p1907_p9 = pneg %p2192_p8  ;;  %s145_s25 = sshll.u32 %s2125_s24, 4  ;;  %s2204_s25 = int_to_ptr.vmem [resolvable:$true] %s145_s25 }
  0x11   : > { %p1967_p11 = scmp.ne.s32.totalorder %s2467_s1, %s1966_s28  ;;  %p1973_p3 = scmp.lt.u32.totalorder %s1966_s28, %s2467_s1 }
  0x12   : > { %p2200_p10 = pnand %p1907_p9, %p2470_p1 }
  0x14   : > { %p1968_p12 = pneg %p2200_p10 }
  0x16   : > { %p1969_p13 = pnand %p1968_p12, %p1967_p11 }
  0x18   : > { %p1970_p0 = pneg %p1969_p13 }
  0x1a   : > { %p1975_p5 = pnand %p1973_p3, %p1970_p0 }
  0x1c   : > { %1978 = shalt.err (!%p1975_p5)
}
  0x1d   : > { %s1979_s6 = scalar_lea.vmem %s132_s22, 10240  ;;  %p1987_p2 = scmp.lt.s32.totalorder %s132_s22, %s132_s22 }
  0x1e   : > { %p1980_p7 = scmp.ne.s32.totalorder %s132_s22, %s1979_s6  ;;  %p1988_p6 = scmp.lt.s32.totalorder %s1979_s6, %s1979_s6 }
  0x20   : > { %p1982_p9 = pnand %p1980_p7, %p1968_p12  ;;  %p1989_p4 = por %p1988_p6, %p1987_p2 }
  0x22   : > { %p1983_p1 = pneg %p1982_p9 }
  0x24   : > { %p1990_p8 = pnand %p1989_p4, %p1983_p1 }
  0x26   : > { %1993 = shalt.err (!%p1990_p8)
}
  0x27   : > { %s2126_s7 = smov 128   ;;  %s2127_s8 = smov 8  }
  0x28   : > { %1910 = dma.hbm_to_vmem [thread:$0]  (!%p2200_p10), %s2467_s1, 10240, %s132_s22, [#allocation6], %s2126_s7, %s2126_s7, %s2127_s8  }
  0x29   : > { %s1994_s21 = scalar_lea.hbm %s2468_s2, 128 }
  0x2a   : > { %p1995_p1 = scmp.ne.s32.totalorder %s2468_s2, %s1994_s21  ;;  %p2001_p6 = scmp.lt.u32.totalorder %s1994_s21, %s2468_s2 }
  0x2c   : > { %p1997_p2 = pnand %p1995_p1, %p1968_p12 }
  0x2e   : > { %p1998_p4 = pneg %p1997_p2 }
  0x30   : > { %p2003_p8 = pnand %p2001_p6, %p1998_p4 }
  0x32   : > { %2006 = shalt.err (!%p2003_p8)
}
  0x33   : > { %s2007_s22 = scalar_lea.vmem %s2204_s25, 128  ;;  %p2015_p3 = scmp.lt.s32.totalorder %s2204_s25, %s2204_s25 }
  0x34   : > { %p2008_p11 = scmp.ne.s32.totalorder %s2204_s25, %s2007_s22  ;;  %p2016_p5 = scmp.lt.s32.totalorder %s2007_s22, %s2007_s22 }
  0x36   : > { %p2010_p13 = pnand %p2008_p11, %p1968_p12  ;;  %p2017_p7 = por %p2016_p5, %p2015_p3 }
  0x38   : > { %p2011_p0 = pneg %p2010_p13 }
  0x3a   : > { %p2018_p9 = pnand %p2017_p7, %p2011_p0 }
  0x3c   : > { %2021 = shalt.err (!%p2018_p9)
}
  0x3d   : > { %1913 = dma.hbm_to_vmem [thread:$0]  (!%p2200_p10), %s2468_s2, 128, %s2204_s25, [#allocation6]  }
  0x3e   : > { %s2257_s4 = sadd.s32 1, %s2122_s15   ;;  %s27_s23 = sadd.s32 1, %s2118_s14 }
  0x3f   : > { %s24_s5 = ssub.s32 %s2122_s15, %s2257_s4  ;;  %p34_p12 = scmp.ne.s32.totalorder %s2118_s14, %s2114_s13 }
  0x40   : > { %p25_p1 = scmp.eq.s32.totalorder %s24_s5, 0  ;;  %p35_p2 = scmp.eq.s32.totalorder %s2122_s15, 0 }
  0x41   : > { %p2477_p4 = scmp.eq.s32.totalorder %s2173_s16, 7  ;;  %p1924_p8 = scmp.lt.s32.totalorder %s2122_s15, 8 }
  0x42   : > { %s2273_s9 = scalar_select %p25_p1, %s2118_s14, %s27_s23  }
  0x43   : > { %p2267_p6 = por %p2477_p4, %p34_p12  ;;  %p36_p11 = por %p35_p2, %p34_p12 }
  0x44   : > { %s156_s10 = sand.u32 1, %s2118_s14   ;;  %s1277_s25 = sshll.u32 %s2122_s15, 11 }
  0x45   : > { %s1259_s11 = sshll.u32 %s156_s10, 7  ;;  %s2280_s24 = scalar_lea.hbm %s2466_s0, %s1277_s25 }
  0x46   : > { %s160_s26 = scalar_lea.vmem [#allocation2], %s1259_s11  ;;  %p2284_p10 = pnand %p1924_p8, %p36_p11 }
  0x47   : > { %s167_s27 = sshll.u32 %s160_s26, 4  ;;  %s2288_s22 = scalar_lea.sflag [#allocation3], %s156_s10  ;;  %s2282_s27 = int_to_ptr.vmem [resolvable:$true] %s167_s27 }
  0x48   : > { %s2022_s29 = scalar_lea.hbm %s2280_s24, 2048  ;;  %p2024_p0 = pneg %p2284_p10 }
  0x49   : > { %p2023_p13 = scmp.ne.s32.totalorder %s2280_s24, %s2022_s29  ;;  %s2027_s5 = scalar_lea.hbm %s2466_s0, 16384 }
  0x4a   : > { %p2028_p7 = scmp.lt.u32.totalorder %s2280_s24, %s2466_s0  ;;  %p2029_p9 = scmp.lt.u32.totalorder %s2027_s5, %s2022_s29 }
  0x4b   : > { %p2025_p3 = pnand %p2024_p0, %p2023_p13  ;;  %p2031_p1 = scmp.lt.u32.totalorder %s2022_s29, %s2280_s24 }
  0x4c   : > { %p2030_p12 = por %p2029_p9, %p2028_p7 }
  0x4d   : > { %p2026_p5 = pneg %p2025_p3 }
  0x4e   : > { %p2032_p2 = por %p2031_p1, %p2030_p12 }
  0x50   : > { %p2033_p4 = pnand %p2032_p2, %p2026_p5 }
  0x52   : > { %2036 = shalt.err (!%p2033_p4)
}
  0x53   : > { %s2037_s10 = scalar_lea.vmem %s2282_s27, 2048  ;;  %s2128_s17 = smov [#allocation2]  }
  0x54   : > { %p2038_p8 = scmp.ne.s32.totalorder %s2282_s27, %s2037_s10  ;;  %s2042_s21 = sshll.u32 %s2128_s17, 4  ;;  %s2043_s21 = int_to_ptr.vmem [resolvable:$false] %s2042_s21 }
  0x55   : > { %s2044_s26 = scalar_lea.vmem %s2043_s21, 4096  ;;  %p2045_p3 = scmp.lt.s32.totalorder %s2282_s27, %s2043_s21 }
  0x56   : > { %p2040_p11 = pnand %p2038_p8, %p2024_p0  ;;  %p2046_p7 = scmp.lt.s32.totalorder %s2044_s26, %s2037_s10 }
  0x58   : > { %p2041_p13 = pneg %p2040_p11  ;;  %p2047_p9 = por %p2046_p7, %p2045_p3 }
  0x5a   : > { %p2048_p12 = pnand %p2047_p9, %p2041_p13 }
  0x5c   : > { %2051 = shalt.err (!%p2048_p12)
}
  0x5d   : > { %1917 = dma.hbm_to_vmem [thread:$0]  (!%p2284_p10), %s2280_s24, 2048, %s2282_s27, %s2288_s22, %s2126_s7, %s2126_s7, %s2127_s8  }
  0x5e   : > { %p2480_p0 = scmp.ne.s32.totalorder %s2475_s20, 0 }
  0x5f   : > { %s2322_s29 = sand.u32 (!%p2480_p0), 1, %s2114_s13   ;;  %p2481_p5 = scmp.ne.s32.totalorder (!%p2480_p0), %s2473_s18, 0 }
  0x60   : > { %179 = sbr.rel (%p2480_p0) target bundleno = 1272 (0x4f8), region = 32  ;;  %s1263_s30 = sshll.u32 (!%p2480_p0), %s2322_s29, 7 }
  0x61   : > { %s182_s23 = scalar_lea.sflag (!%p2480_p0), [#allocation3], %s2322_s29  ;;  %s2328_s28 = scalar_lea.vmem (!%p2480_p0), [#allocation2], %s1263_s30 }
  0x67   : > { %2097 = dma.done.wait (%p2481_p5), %s182_s23, 2048  }
  0x68   : > { %2099 = vsyncadd (%p2481_p5), %s182_s23, 4294965248  ;;  %p2482_p10 = scmp.eq.s32.totalorder %s2173_s16, 0 }
  0x6a   : > { %2101 = dma.done.wait (%p2482_p10), [#allocation6], 10368   ;;  %p2483_p1 = pmov %p2482_p10 }
  0x6b   : > { %v234_v0 = vld [vmem:[#allocation5] sm:$0xff]  ;;  %v235_v1 = vld [vmem:[#allocation5 + $0x8] sm:$0xff]  ;;  %v236_v2 = vld [vmem:[#allocation5 + $0x10] sm:$0xff]  ;;  %s2398_s18 = scalar_lea.vmem [#allocation8], %s1263_s30  ;;  %s1278_s20 = sshll.u32 %s2173_s16, 11 }
  0x6c   : > { %2103 = vsyncadd (%p2483_p1), [#allocation6], 4294956928  ;;  %v1719_v3 = vpack.c.bf16 %v235_v1, %v234_v0  ;;  %v237_v4 = vld [vmem:[#allocation5 + $0x18] sm:$0xff]  ;;  %v238_v6 = vld [vmem:[#allocation5 + $0x20] sm:$0xff]  ;;  %s1162_s7 = sshll.u32 %s2398_s18, 4  ;;  %s2419_s27 = scalar_lea.hbm %s2469_s3, %s1278_s20  ;;  %s2421_s7 = int_to_ptr.vmem [resolvable:$true] %s1162_s7 }
  0x6d   : > { %v1723_v5 = vpack.c.bf16 %v237_v4, %v236_v2  ;;  %v239_v7 = vld [vmem:[#allocation5 + $0x28] sm:$0xff]  ;;  %v218_v9 = vld [vmem:[%s2328_s28] sm:$0xff]  ;;  %v240_v10 = vld [vmem:[#allocation5 + $0x30] sm:$0xff]  ;;  %s1149_s16 = scalar_lea.sflag [#allocation4], %s2322_s29  ;;  %s2052_s22 = scalar_lea.vmem %s2421_s7, 2048 }
  0x6e   : > { %1720 = vmatprep.subr.bf16.mxu0 %v1719_v3  ;;  %v1727_v8 = vpack.c.bf16 %v239_v7, %v238_v6  ;;  %v241_v11 = vld [vmem:[#allocation5 + $0x38] sm:$0xff]  ;;  %1471 = vmatprep.mubr.f32.mxu0 %v218_v9  ;;  %v242_v13 = vld [vmem:[#allocation5 + $0x40] sm:$0xff]  ;;  %v243_v14 = vld [vmem:[#allocation5 + $0x48] sm:$0xff]  ;;  %p2053_p2 = scmp.ne.s32.totalorder %s2421_s7, %s2052_s22  ;;  %s2129_s5 = smov [#allocation8]  }
  0x6f   : > { %1722 = vmatpush3.bf16.msra.mxu0 %v1719_v3  ;;  %v1731_v12 = vpack.c.bf16 %v241_v11, %v240_v10  ;;  %v417_v15 = vld [vmem:[#allocation5 + $0x80] sm:$0xff]  ;;  %v418_v16 = vld [vmem:[#allocation5 + $0x88] sm:$0xff]  ;;  %v419_v17 = vld [vmem:[#allocation5 + $0x90] sm:$0xff]  ;;  %v1735_v21 = vpack.c.bf16 %v243_v14, %v242_v13  ;;  %s2056_s11 = sshll.u32 %s2129_s5, 4  ;;  %s2057_s11 = int_to_ptr.vmem [resolvable:$false] %s2056_s11 }
  0x70   : > { %1724 = vmatprep.subr.bf16.mxu0 %v1723_v5  ;;  %v420_v18 = vld [vmem:[#allocation5 + $0x98] sm:$0xff]  ;;  %v1751_v19 = vpack.c.bf16 %v418_v16, %v417_v15  ;;  %v421_v22 = vld [vmem:[#allocation5 + $0xa0] sm:$0xff]  ;;  %v422_v23 = vld [vmem:[#allocation5 + $0xa8] sm:$0xff]  ;;  %p2054_p4 = pnand %p2053_p2, %p2267_p6  ;;  %s2058_s25 = scalar_lea.vmem %s2057_s11, 4096 }
  0x71   : > { %v1755_v20 = vpack.c.bf16 %v420_v18, %v419_v17  ;;  %v244_v24 = vld [vmem:[#allocation5 + $0x50] sm:$0xff]  ;;  %v245_v25 = vld [vmem:[#allocation5 + $0x58] sm:$0xff]  ;;  %v1759_v26 = vpack.c.bf16 %v422_v23, %v421_v22  ;;  %v246_v30 = vld [vmem:[#allocation5 + $0x60] sm:$0xff]  ;;  %p2059_p11 = scmp.lt.s32.totalorder %s2421_s7, %s2057_s11  ;;  %p2060_p13 = scmp.lt.s32.totalorder %s2058_s25, %s2052_s22 }
  0x72   : > { %1752 = vmatprep.subr.bf16.mxu1 %v1751_v19  ;;  %v1739_v27 = vpack.c.bf16 %v245_v25, %v244_v24  ;;  %v423_v28 = vld [vmem:[#allocation5 + $0xb0] sm:$0xff]  ;;  %v424_v29 = vld [vmem:[#allocation5 + $0xb8] sm:$0xff]  ;;  %v247_v31 = vld [vmem:[#allocation5 + $0x68] sm:$0xff]  ;;  %p2055_p8 = pneg %p2054_p4 }
  0x73   : > { %1726 = vmatpush3.bf16.msra.mxu0 %v1723_v5  ;;  %1754 = vmatpush3.bf16.msra.mxu1 %v1751_v19  ;;  %v1763_v32 = vpack.c.bf16 %v424_v29, %v423_v28  ;;  %v1743_v33 = vpack.c.bf16 %v247_v31, %v246_v30  ;;  %v425_v34 = vld [vmem:[#allocation5 + $0xc0] sm:$0xff]  ;;  %v426_v35 = vld [vmem:[#allocation5 + $0xc8] sm:$0xff]  ;;  %v248_v36 = vld [vmem:[#allocation5 + $0x70] sm:$0xff]  ;;  %p2061_p3 = por %p2060_p13, %p2059_p11 }
  0x74   : > { %1728 = vmatprep.subr.bf16.mxu0 %v1727_v8  ;;  %1756 = vmatprep.subr.bf16.mxu1 %v1755_v20  ;;  %v249_v37 = vld [vmem:[#allocation5 + $0x78] sm:$0xff]  ;;  %v1767_v38 = vpack.c.bf16 %v426_v35, %v425_v34  ;;  %v427_v40 = vld [vmem:[#allocation5 + $0xd0] sm:$0xff]  ;;  %v429_v43 = vld [vmem:[#allocation5 + $0xe0] sm:$0xff] }
  0x75   : > { %v1747_v39 = vpack.c.bf16 %v249_v37, %v248_v36  ;;  %v428_v41 = vld [vmem:[#allocation5 + $0xd8] sm:$0xff]  ;;  %v430_v44 = vld [vmem:[#allocation5 + $0xe8] sm:$0xff]  ;;  %v220_v47 = vld [vmem:[%s2328_s28 + $0x10] sm:$0xff]  ;;  %p2062_p7 = pnand %p2061_p3, %p2055_p8 }
  0x76   : > { %v1771_v42 = vpack.c.bf16 %v428_v41, %v427_v40  ;;  %v219_v45 = vld [vmem:[%s2328_s28 + $0x8] sm:$0xff]  ;;  %v1775_v46 = vpack.c.bf16 %v430_v44, %v429_v43  ;;  %v221_v48 = vld [vmem:[%s2328_s28 + $0x18] sm:$0xff]  ;;  %v222_v49 = vld [vmem:[%s2328_s28 + $0x20] sm:$0xff] }
  0x77   : > { %1730 = vmatpush3.bf16.msra.mxu0 %v1727_v8  ;;  %1758 = vmatpush3.bf16.msra.mxu1 %v1755_v20  ;;  %v223_v50 = vld [vmem:[%s2328_s28 + $0x28] sm:$0xff]  ;;  %v224_v51 = vld [vmem:[%s2328_s28 + $0x30] sm:$0xff]  ;;  %v225_v52 = vld [vmem:[%s2328_s28 + $0x38] sm:$0xff] }
  0x78   : > { %1732 = vmatprep.subr.bf16.mxu0 %v1731_v12  ;;  %1760 = vmatprep.subr.bf16.mxu1 %v1759_v26  ;;  %v226_v53 = vld [vmem:[%s2328_s28 + $0x40] sm:$0xff]  ;;  %v227_v54 = vld [vmem:[%s2328_s28 + $0x48] sm:$0xff]  ;;  %v228_v55 = vld [vmem:[%s2328_s28 + $0x50] sm:$0xff] }
  0x79   : > { %v229_v56 = vld [vmem:[%s2328_s28 + $0x58] sm:$0xff]  ;;  %v230_v57 = vld [vmem:[%s2328_s28 + $0x60] sm:$0xff]  ;;  %v231_v58 = vld [vmem:[%s2328_s28 + $0x68] sm:$0xff] }
  0x7a   : > { %v232_v59 = vld [vmem:[%s2328_s28 + $0x70] sm:$0xff]  ;;  %v233_v60 = vld [vmem:[%s2328_s28 + $0x78] sm:$0xff]  ;;  %v600_v0 = vld [vmem:[#allocation5 + $0x100] sm:$0xff] }
  0x7b   : > { %1734 = vmatpush3.bf16.msra.mxu0 %v1731_v12  ;;  %1762 = vmatpush3.bf16.msra.mxu1 %v1759_v26  ;;  %v431_v61 = vld [vmem:[#allocation5 + $0xf0] sm:$0xff]  ;;  %v432_v62 = vld [vmem:[#allocation5 + $0xf8] sm:$0xff]  ;;  %v601_v1 = vld [vmem:[#allocation5 + $0x108] sm:$0xff] }
  0x7c   : > { %1736 = vmatprep.subr.bf16.mxu0 %v1735_v21  ;;  %1764 = vmatprep.subr.bf16.mxu1 %v1763_v32  ;;  %v1779_v63 = vpack.c.bf16 %v432_v62, %v431_v61  ;;  %v602_v2 = vld [vmem:[#allocation5 + $0x110] sm:$0xff]  ;;  %v1783_v3 = vpack.c.bf16 %v601_v1, %v600_v0  ;;  %v603_v4 = vld [vmem:[#allocation5 + $0x118] sm:$0xff]  ;;  %v604_v6 = vld [vmem:[#allocation5 + $0x120] sm:$0xff] }
  0x7d   : > { %v1787_v5 = vpack.c.bf16 %v603_v4, %v602_v2  ;;  %v605_v7 = vld [vmem:[#allocation5 + $0x128] sm:$0xff]  ;;  %v606_v9 = vld [vmem:[#allocation5 + $0x130] sm:$0xff]  ;;  %v607_v10 = vld [vmem:[#allocation5 + $0x138] sm:$0xff] }
  0x7e   : > { %v1791_v8 = vpack.c.bf16 %v605_v7, %v604_v6  ;;  %v1795_v11 = vpack.c.bf16 %v607_v10, %v606_v9  ;;  %v608_v12 = vld [vmem:[#allocation5 + $0x140] sm:$0xff]  ;;  %v609_v13 = vld [vmem:[#allocation5 + $0x148] sm:$0xff]  ;;  %v610_v15 = vld [vmem:[#allocation5 + $0x150] sm:$0xff] }
  0x7f   : > { %1738 = vmatpush3.bf16.msra.mxu0 %v1735_v21  ;;  %1766 = vmatpush3.bf16.msra.mxu1 %v1763_v32  ;;  %v1799_v14 = vpack.c.bf16 %v609_v13, %v608_v12  ;;  %v611_v16 = vld [vmem:[#allocation5 + $0x158] sm:$0xff]  ;;  %v612_v18 = vld [vmem:[#allocation5 + $0x160] sm:$0xff]  ;;  %v613_v19 = vld [vmem:[#allocation5 + $0x168] sm:$0xff] }
  0x80   : > { %1740 = vmatprep.subr.bf16.mxu0 %v1739_v27  ;;  %1768 = vmatprep.subr.bf16.mxu1 %v1767_v38  ;;  %v1803_v17 = vpack.c.bf16 %v611_v16, %v610_v15  ;;  %v1807_v20 = vpack.c.bf16 %v613_v19, %v612_v18  ;;  %v1267_v21 = vld [vmem:[#allocation7] ss:$0 sm:$0xff]  ;;  %v614_v6 = vld [vmem:[#allocation5 + $0x170] sm:$0xff]  ;;  %v615_v7 = vld [vmem:[#allocation5 + $0x178] sm:$0xff] }
  0x81   : > { %v783_v9 = vld [vmem:[#allocation5 + $0x180] sm:$0xff]  ;;  %v784_v10 = vld [vmem:[#allocation5 + $0x188] sm:$0xff]  ;;  %v786_v13 = vld [vmem:[#allocation5 + $0x198] sm:$0xff] }
  0x82   : > { %v1815_v12 = vpack.c.bf16 %v784_v10, %v783_v9  ;;  %v787_v15 = vld [vmem:[#allocation5 + $0x1a0] sm:$0xff]  ;;  %v788_v16 = vld [vmem:[#allocation5 + $0x1a8] sm:$0xff]  ;;  %v789_v18 = vld [vmem:[#allocation5 + $0x1b0] sm:$0xff] }
  0x83   : > { %1742 = vmatpush3.bf16.msra.mxu0 %v1739_v27  ;;  %1770 = vmatpush3.bf16.msra.mxu1 %v1767_v38  ;;  %v790_v19 = vld [vmem:[#allocation5 + $0x1b8] sm:$0xff] }
  0x84   : > { %1744 = vmatprep.subr.bf16.mxu0 %v1743_v33  ;;  %1772 = vmatprep.subr.bf16.mxu1 %v1771_v42 }
  0x87   : > { %1746 = vmatpush3.bf16.msra.mxu0 %v1743_v33  ;;  %1774 = vmatpush3.bf16.msra.mxu1 %v1771_v42 }
  0x88   : > { %1748 = vmatprep.subr.bf16.mxu0 %v1747_v39  ;;  %1776 = vmatprep.subr.bf16.mxu1 %v1775_v46 }
  0x8b   : > { %1750 = vmatpush3.bf16.msra.mxu0 %v1747_v39  ;;  %1778 = vmatpush3.bf16.msra.mxu1 %v1775_v46 }
  0x8c   : > { %1780 = vmatprep.subr.bf16.mxu1 %v1779_v63  ;;  %1784 = vmatprep.subr.bf16.mxu0 %v1783_v3 }
  0x8e   : > { %1472 = vmatmul.mubr.f32.vlgmr.msra.gmra.mrb[0].mxu0 %v219_v45 }
  0x8f   : > { %1474 = vmatprep.mubr.f32.mxu0 %v220_v47  ;;  %1782 = vmatpush3.bf16.msra.mxu1 %v1779_v63 }
  0x90   : > { %1786 = vmatpush3.bf16.msra.mxu0 %v1783_v3  ;;  %1816 = vmatprep.subr.bf16.mxu1 %v1815_v12 }
  0x91   : > { %1788 = vmatprep.subr.bf16.mxu0 %v1787_v5 }
  0x92   : > { %1475 = vmatmul.mubr.f32.gmra.mrb[2].mxu0 %v221_v48 }
  0x93   : > { %1477 = vmatprep.mubr.f32.mxu0 %v222_v49 }
  0x94   : > { %1790 = vmatpush3.bf16.msra.mxu0 %v1787_v5 }
  0x95   : > { %1792 = vmatprep.subr.bf16.mxu0 %v1791_v8 }
  0x96   : > { %1478 = vmatmul.mubr.f32.gmra.mrb[4].mxu0 %v223_v50 }
  0x97   : > { %1480 = vmatprep.mubr.f32.mxu0 %v224_v51 }
  0x98   : > { %1794 = vmatpush3.bf16.msra.mxu0 %v1791_v8  ;;  %v1811_v8 = vpack.c.bf16 %v615_v7, %v614_v6 }
  0x99   : > { %1796 = vmatprep.subr.bf16.mxu0 %v1795_v11 }
  0x9a   : > { %1481 = vmatmul.mubr.f32.gmra.mrb[6].mxu0 %v225_v52 }
  0x9b   : > { %1483 = vmatprep.mubr.f32.mxu0 %v226_v53 }
  0x9c   : > { %1798 = vmatpush3.bf16.msra.mxu0 %v1795_v11  ;;  %v785_v11 = vld [vmem:[#allocation5 + $0x190] sm:$0xff] }
  0x9d   : > { %1800 = vmatprep.subr.bf16.mxu0 %v1799_v14 }
  0x9e   : > { %1484 = vmatmul.mubr.f32.gmra.mrb[8].mxu0 %v227_v54 }
  0x9f   : > { %1486 = vmatprep.mubr.f32.mxu0 %v228_v55 }
  0xa0   : > { %1802 = vmatpush3.bf16.msra.mxu0 %v1799_v14  ;;  %v1819_v14 = vpack.c.bf16 %v786_v13, %v785_v11 }
  0xa1   : > { %1804 = vmatprep.subr.bf16.mxu0 %v1803_v17 }
  0xa2   : > { %1487 = vmatmul.mubr.f32.gmra.mrb[10].mxu0 %v229_v56 }
  0xa3   : > { %1489 = vmatprep.mubr.f32.mxu0 %v230_v57 }
  0xa4   : > { %1806 = vmatpush3.bf16.msra.mxu0 %v1803_v17  ;;  %v1823_v17 = vpack.c.bf16 %v788_v16, %v787_v15  ;;  %v797_v15 = vld [vmem:[#allocation5 + $0x1f0] sm:$0xff]  ;;  %v798_v16 = vld [vmem:[#allocation5 + $0x1f8] sm:$0xff] }
  0xa5   : > { %1808 = vmatprep.subr.bf16.mxu0 %v1807_v20 }
  0xa6   : > { %1490 = vmatmul.mubr.f32.gmra.mrb[12].mxu0 %v231_v58 }
  0xa7   : > { %1492 = vmatprep.mubr.f32.mxu0 %v232_v59 }
  0xa8   : > { %1810 = vmatpush3.bf16.msra.mxu0 %v1807_v20  ;;  %v1827_v20 = vpack.c.bf16 %v790_v19, %v789_v18  ;;  %v966_v18 = vld [vmem:[#allocation5 + $0x200] sm:$0xff]  ;;  %v967_v19 = vld [vmem:[#allocation5 + $0x208] sm:$0xff] }
  0xa9   : > { %1812 = vmatprep.subr.bf16.mxu0 %v1811_v8 }
  0xaa   : > { %1493 = vmatmul.mubr.f32.gmra.mrb[14].mxu0 %v233_v60 }
  0xac   : > { %1814 = vmatpush3.bf16.msra.mxu0 %v1811_v8 }
 0x161   : > { %v1473_v22 = vpop.f32.mrb[0].mxu0 }
 0x162   : > { %v327_v23 = vadd.f32 %v1473_v22, %v1267_v21  ;;  %v321_v24 = vpop.f32.mrb[1].mxu0  ;;  %v792_v22 = vld [vmem:[#allocation5 + $0x1c8] sm:$0xff] }
 0x163   : > { %v322_v25 = vadd.f32 %v1267_v21, %v321_v24  ;;  %v793_v24 = vld [vmem:[#allocation5 + $0x1d0] sm:$0xff] }
 0x164   : > { %v401_v28 = vmax.f32 %v327_v23, 0.0 }
 0x165   : > { %v1476_v26 = vpop.f32.mrb[2].mxu0  ;;  %v400_v27 = vmax.f32 %v322_v25, 0.0  ;;  %v794_v25 = vld [vmem:[#allocation5 + $0x1d8] sm:$0xff] }
 0x166   : > { %v337_v29 = vadd.f32 %v1476_v26, %v1267_v21  ;;  %v331_v30 = vpop.f32.mrb[3].mxu0  ;;  %v1835_v26 = vpack.c.bf16 %v794_v25, %v793_v24  ;;  %v970_v24 = vld [vmem:[#allocation5 + $0x220] sm:$0xff]  ;;  %v971_v25 = vld [vmem:[#allocation5 + $0x228] sm:$0xff] }
 0x167   : > { %v332_v31 = vadd.f32 %v1267_v21, %v331_v30  ;;  %1527 = vmatprep.mubr.f32.mxu1 %v400_v27  ;;  %v795_v27 = vld [vmem:[#allocation5 + $0x1e0] sm:$0xff] }
 0x168   : > { %1528 = vmatmul.mubr.f32.vlgmr.msra.gmra.mrb[0].mxu1 %v401_v28  ;;  %v403_v34 = vmax.f32 %v337_v29, 0.0  ;;  %v796_v28 = vld [vmem:[#allocation5 + $0x1e8] sm:$0xff]  ;;  %v1268_v30 = vld [vmem:[#allocation7 + $0x1] ss:$0 sm:$0xff] }
 0x169   : > { %v402_v32 = vmax.f32 %v332_v31, 0.0  ;;  %v1479_v33 = vpop.f32.mrb[4].mxu0  ;;  %1818 = vmatpush3.bf16.msra.mxu1 %v1815_v12  ;;  %v1839_v29 = vpack.c.bf16 %v796_v28, %v795_v27  ;;  %v972_v27 = vld [vmem:[#allocation5 + $0x230] sm:$0xff]  ;;  %v973_v28 = vld [vmem:[#allocation5 + $0x238] sm:$0xff] }
 0x16a   : > { %v347_v35 = vadd.f32 %v1479_v33, %v1267_v21  ;;  %v341_v36 = vpop.f32.mrb[5].mxu0  ;;  %1820 = vmatprep.subr.bf16.mxu1 %v1819_v14 }
 0x16b   : > { %v342_v37 = vadd.f32 %v1267_v21, %v341_v36  ;;  %1530 = vmatprep.mubr.f32.mxu1 %v402_v32 }
 0x16c   : > { %1531 = vmatmul.mubr.f32.gmra.mrb[2].mxu1 %v403_v34  ;;  %v405_v40 = vmax.f32 %v347_v35, 0.0 }
 0x16d   : > { %v404_v38 = vmax.f32 %v342_v37, 0.0  ;;  %v1482_v39 = vpop.f32.mrb[6].mxu0  ;;  %1822 = vmatpush3.bf16.msra.mxu1 %v1819_v14 }
 0x16e   : > { %v357_v41 = vadd.f32 %v1482_v39, %v1267_v21  ;;  %v351_v42 = vpop.f32.mrb[7].mxu0  ;;  %1824 = vmatprep.subr.bf16.mxu1 %v1823_v17 }
 0x16f   : > { %v352_v43 = vadd.f32 %v1267_v21, %v351_v42  ;;  %1533 = vmatprep.mubr.f32.mxu1 %v404_v38 }
 0x170   : > { %1534 = vmatmul.mubr.f32.gmra.mrb[4].mxu1 %v405_v40  ;;  %v407_v46 = vmax.f32 %v357_v41, 0.0 }
 0x171   : > { %v406_v44 = vmax.f32 %v352_v43, 0.0  ;;  %v1485_v45 = vpop.f32.mrb[8].mxu0  ;;  %1826 = vmatpush3.bf16.msra.mxu1 %v1823_v17  ;;  %v1843_v17 = vpack.c.bf16 %v798_v16, %v797_v15 }
 0x172   : > { %v367_v47 = vadd.f32 %v1485_v45, %v1267_v21  ;;  %v361_v48 = vpop.f32.mrb[9].mxu0  ;;  %1828 = vmatprep.subr.bf16.mxu1 %v1827_v20 }
 0x173   : > { %v362_v49 = vadd.f32 %v1267_v21, %v361_v48  ;;  %1536 = vmatprep.mubr.f32.mxu1 %v406_v44 }
 0x174   : > { %1537 = vmatmul.mubr.f32.gmra.mrb[6].mxu1 %v407_v46  ;;  %v409_v52 = vmax.f32 %v367_v47, 0.0 }
 0x175   : > { %v408_v50 = vmax.f32 %v362_v49, 0.0  ;;  %v1488_v51 = vpop.f32.mrb[10].mxu0  ;;  %1830 = vmatpush3.bf16.msra.mxu1 %v1827_v20  ;;  %v968_v20 = vld [vmem:[#allocation5 + $0x210] sm:$0xff] }
 0x176   : > { %v377_v53 = vadd.f32 %v1488_v51, %v1267_v21  ;;  %v371_v54 = vpop.f32.mrb[11].mxu0 }
 0x177   : > { %v372_v55 = vadd.f32 %v1267_v21, %v371_v54  ;;  %1539 = vmatprep.mubr.f32.mxu1 %v408_v50 }
 0x178   : > { %1540 = vmatmul.mubr.f32.gmra.mrb[8].mxu1 %v409_v52  ;;  %v411_v58 = vmax.f32 %v377_v53, 0.0 }
 0x179   : > { %v410_v56 = vmax.f32 %v372_v55, 0.0  ;;  %v1491_v57 = vpop.f32.mrb[12].mxu0 }
 0x17a   : > { %v387_v59 = vadd.f32 %v1491_v57, %v1267_v21  ;;  %v381_v60 = vpop.f32.mrb[13].mxu0 }
 0x17b   : > { %v382_v61 = vadd.f32 %v1267_v21, %v381_v60  ;;  %1542 = vmatprep.mubr.f32.mxu1 %v410_v56 }
 0x17c   : > { %1543 = vmatmul.mubr.f32.gmra.mrb[10].mxu1 %v411_v58  ;;  %v413_v0 = vmax.f32 %v387_v59, 0.0 }
 0x17d   : > { %v412_v62 = vmax.f32 %v382_v61, 0.0  ;;  %v1494_v63 = vpop.f32.mrb[14].mxu0 }
 0x17e   : > { %v397_v1 = vadd.f32 %v1494_v63, %v1267_v21  ;;  %v391_v2 = vpop.f32.mrb[15].mxu0 }
 0x17f   : > { %v392_v3 = vadd.f32 %v1267_v21, %v391_v2  ;;  %1545 = vmatprep.mubr.f32.mxu1 %v412_v62  ;;  %v791_v21 = vld [vmem:[#allocation5 + $0x1c0] sm:$0xff] }
 0x180   : > { %1546 = vmatmul.mubr.f32.gmra.mrb[12].mxu1 %v413_v0  ;;  %v415_v5 = vmax.f32 %v397_v1, 0.0  ;;  %v1831_v23 = vpack.c.bf16 %v792_v22, %v791_v21  ;;  %v1847_v21 = vpack.c.bf16 %v967_v19, %v966_v18  ;;  %v969_v22 = vld [vmem:[#allocation5 + $0x218] sm:$0xff] }
 0x181   : > { %v414_v4 = vmax.f32 %v392_v3, 0.0 }
 0x182   : > { %1832 = vmatprep.subr.bf16.mxu1 %v1831_v23  ;;  %1848 = vmatprep.subr.bf16.mxu0 %v1847_v21 }
 0x183   : > { %1548 = vmatprep.mubr.f32.mxu1 %v414_v4  ;;  %1834 = vmatpush3.bf16.msra.mxu1 %v1831_v23  ;;  %v1851_v23 = vpack.c.bf16 %v969_v22, %v968_v20 }
 0x184   : > { %1549 = vmatmul.mubr.f32.gmra.mrb[14].mxu1 %v415_v5  ;;  %1836 = vmatprep.subr.bf16.mxu1 %v1835_v26 }
 0x187   : > { %1838 = vmatpush3.bf16.msra.mxu1 %v1835_v26  ;;  %v1855_v26 = vpack.c.bf16 %v971_v25, %v970_v24  ;;  %v980_v24 = vld [vmem:[#allocation5 + $0x270] sm:$0xff]  ;;  %v981_v25 = vld [vmem:[#allocation5 + $0x278] sm:$0xff] }
 0x188   : > { %1840 = vmatprep.subr.bf16.mxu1 %v1839_v29 }
 0x18b   : > { %1842 = vmatpush3.bf16.msra.mxu1 %v1839_v29  ;;  %v2354_v29 = vpack.c.bf16 %v973_v28, %v972_v27  ;;  %v1270_v27 = vld [vmem:[#allocation7 + $0x3] ss:$0 sm:$0xff] }
 0x18c   : > { %1844 = vmatprep.subr.bf16.mxu1 %v1843_v17 }
 0x18f   : > { %1846 = vmatpush3.bf16.msra.mxu1 %v1843_v17 }
 0x190   : > { %1879 = vmatprep.subr.bf16.mxu1 %v1847_v21 }
 0x23b   : > { %v1529_v31 = vpop.f32.mrb[0].mxu1 }
 0x23c   : > { %v510_v32 = vadd.f32 %v1529_v31, %v1268_v30  ;;  %v504_v33 = vpop.f32.mrb[1].mxu1  ;;  %v975_v31 = vld [vmem:[#allocation5 + $0x248] sm:$0xff] }
 0x23d   : > { %v505_v34 = vadd.f32 %v1268_v30, %v504_v33  ;;  %v976_v33 = vld [vmem:[#allocation5 + $0x250] sm:$0xff] }
 0x23e   : > { %v584_v37 = vmax.f32 %v510_v32, 0.0 }
 0x23f   : > { %v583_v35 = vmax.f32 %v505_v34, 0.0  ;;  %v1532_v36 = vpop.f32.mrb[2].mxu1  ;;  %v977_v34 = vld [vmem:[#allocation5 + $0x258] sm:$0xff] }
 0x240   : > { %v520_v38 = vadd.f32 %v1532_v36, %v1268_v30  ;;  %v514_v39 = vpop.f32.mrb[3].mxu1  ;;  %v978_v36 = vld [vmem:[#allocation5 + $0x260] sm:$0xff] }
 0x241   : > { %v515_v40 = vadd.f32 %v1268_v30, %v514_v39  ;;  %1583 = vmatprep.mubr.f32.mxu0 %v583_v35  ;;  %v2361_v35 = vpack.c.bf16 %v977_v34, %v976_v33  ;;  %v2370_v39 = vld [vmem:[#allocation7 + $0x2] ss:$0 sm:$0xff] }
 0x242   : > { %1584 = vmatmul.mubr.f32.vlgmr.msra.gmra.mrb[16].mxu0 %v584_v37  ;;  %v586_v43 = vmax.f32 %v520_v38, 0.0  ;;  %v979_v37 = vld [vmem:[#allocation5 + $0x268] sm:$0xff] }
 0x243   : > { %v585_v41 = vmax.f32 %v515_v40, 0.0  ;;  %v1535_v42 = vpop.f32.mrb[4].mxu1  ;;  %1850 = vmatpush3.bf16.msra.mxu0 %v1847_v21  ;;  %v2365_v38 = vpack.c.bf16 %v979_v37, %v978_v36 }
 0x244   : > { %v530_v44 = vadd.f32 %v1535_v42, %v1268_v30  ;;  %v524_v45 = vpop.f32.mrb[5].mxu1  ;;  %1852 = vmatprep.subr.bf16.mxu0 %v1851_v23 }
 0x245   : > { %v525_v46 = vadd.f32 %v1268_v30, %v524_v45  ;;  %1586 = vmatprep.mubr.f32.mxu0 %v585_v41 }
 0x246   : > { %1587 = vmatmul.mubr.f32.gmra.mrb[18].mxu0 %v586_v43  ;;  %v588_v49 = vmax.f32 %v530_v44, 0.0 }
 0x247   : > { %v587_v47 = vmax.f32 %v525_v46, 0.0  ;;  %v1538_v48 = vpop.f32.mrb[6].mxu1  ;;  %1854 = vmatpush3.bf16.msra.mxu0 %v1851_v23 }
 0x248   : > { %v540_v50 = vadd.f32 %v1538_v48, %v1268_v30  ;;  %v534_v51 = vpop.f32.mrb[7].mxu1  ;;  %1856 = vmatprep.subr.bf16.mxu0 %v1855_v26 }
 0x249   : > { %v535_v52 = vadd.f32 %v1268_v30, %v534_v51  ;;  %1589 = vmatprep.mubr.f32.mxu0 %v587_v47 }
 0x24a   : > { %1590 = vmatmul.mubr.f32.gmra.mrb[20].mxu0 %v588_v49  ;;  %v590_v55 = vmax.f32 %v540_v50, 0.0 }
 0x24b   : > { %v589_v53 = vmax.f32 %v535_v52, 0.0  ;;  %v1541_v54 = vpop.f32.mrb[8].mxu1  ;;  %1858 = vmatpush3.bf16.msra.mxu0 %v1855_v26 }
 0x24c   : > { %v550_v56 = vadd.f32 %v1541_v54, %v1268_v30  ;;  %v544_v57 = vpop.f32.mrb[9].mxu1  ;;  %1860 = vmatprep.subr.bf16.mxu0 %v2354_v29 }
 0x24d   : > { %v545_v58 = vadd.f32 %v1268_v30, %v544_v57  ;;  %1592 = vmatprep.mubr.f32.mxu0 %v589_v53 }
 0x24e   : > { %1593 = vmatmul.mubr.f32.gmra.mrb[22].mxu0 %v590_v55  ;;  %v592_v61 = vmax.f32 %v550_v56, 0.0 }
 0x24f   : > { %v591_v59 = vmax.f32 %v545_v58, 0.0  ;;  %v1544_v60 = vpop.f32.mrb[10].mxu1  ;;  %1862 = vmatpush3.bf16.msra.mxu0 %v2354_v29 }
 0x250   : > { %v560_v62 = vadd.f32 %v1544_v60, %v1268_v30  ;;  %v554_v63 = vpop.f32.mrb[11].mxu1 }
 0x251   : > { %v555_v0 = vadd.f32 %v1268_v30, %v554_v63  ;;  %1595 = vmatprep.mubr.f32.mxu0 %v591_v59 }
 0x252   : > { %1596 = vmatmul.mubr.f32.gmra.mrb[24].mxu0 %v592_v61  ;;  %v594_v3 = vmax.f32 %v560_v62, 0.0 }
 0x253   : > { %v593_v1 = vmax.f32 %v555_v0, 0.0  ;;  %v1547_v2 = vpop.f32.mrb[12].mxu1 }
 0x254   : > { %v570_v4 = vadd.f32 %v1547_v2, %v1268_v30  ;;  %v564_v5 = vpop.f32.mrb[13].mxu1 }
 0x255   : > { %v565_v6 = vadd.f32 %v1268_v30, %v564_v5  ;;  %1598 = vmatprep.mubr.f32.mxu0 %v593_v1 }
 0x256   : > { %1599 = vmatmul.mubr.f32.gmra.mrb[26].mxu0 %v594_v3  ;;  %v596_v9 = vmax.f32 %v570_v4, 0.0 }
 0x257   : > { %v595_v7 = vmax.f32 %v565_v6, 0.0  ;;  %v1550_v8 = vpop.f32.mrb[14].mxu1 }
 0x258   : > { %v580_v10 = vadd.f32 %v1550_v8, %v1268_v30  ;;  %v574_v11 = vpop.f32.mrb[15].mxu1 }
 0x259   : > { %v575_v12 = vadd.f32 %v1268_v30, %v574_v11  ;;  %1601 = vmatprep.mubr.f32.mxu0 %v595_v7  ;;  %v974_v30 = vld [vmem:[#allocation5 + $0x240] sm:$0xff] }
 0x25a   : > { %1602 = vmatmul.mubr.f32.gmra.mrb[28].mxu0 %v596_v9  ;;  %v598_v14 = vmax.f32 %v580_v10, 0.0  ;;  %v2357_v32 = vpack.c.bf16 %v975_v31, %v974_v30 }
 0x25b   : > { %v597_v13 = vmax.f32 %v575_v12, 0.0 }
 0x25c   : > { %1864 = vmatprep.subr.bf16.mxu0 %v2357_v32 }
 0x25d   : > { %1604 = vmatprep.mubr.f32.mxu0 %v597_v13  ;;  %1866 = vmatpush3.bf16.msra.mxu0 %v2357_v32 }
 0x25e   : > { %1605 = vmatmul.mubr.f32.gmra.mrb[30].mxu0 %v598_v14  ;;  %1868 = vmatprep.subr.bf16.mxu0 %v2361_v35 }
 0x261   : > { %1870 = vmatpush3.bf16.msra.mxu0 %v2361_v35 }
 0x262   : > { %1872 = vmatprep.subr.bf16.mxu0 %v2365_v38 }
 0x265   : > { %1874 = vmatpush3.bf16.msra.mxu0 %v2365_v38 }
 0x315   : > { %v1585_v40 = vpop.f32.mrb[16].mxu0 }
 0x316   : > { %v693_v41 = vadd.f32 %v1585_v40, %v2370_v39  ;;  %v687_v42 = vpop.f32.mrb[17].mxu0 }
 0x317   : > { %v688_v43 = vadd.f32 %v2370_v39, %v687_v42 }
 0x318   : > { %v767_v46 = vmax.f32 %v693_v41, 0.0 }
 0x319   : > { %v766_v44 = vmax.f32 %v688_v43, 0.0  ;;  %v1588_v45 = vpop.f32.mrb[18].mxu0 }
 0x31a   : > { %v703_v47 = vadd.f32 %v1588_v45, %v2370_v39  ;;  %v697_v48 = vpop.f32.mrb[19].mxu0 }
 0x31b   : > { %v698_v49 = vadd.f32 %v2370_v39, %v697_v48  ;;  %1639 = vmatprep.mubr.f32.mxu1 %v766_v44 }
 0x31c   : > { %1640 = vmatmul.mubr.f32.vlgmr.msra.gmra.mrb[16].mxu1 %v767_v46  ;;  %v769_v52 = vmax.f32 %v703_v47, 0.0 }
 0x31d   : > { %v768_v50 = vmax.f32 %v698_v49, 0.0  ;;  %v1591_v51 = vpop.f32.mrb[20].mxu0  ;;  %1887 = vmatpush3.bf16.msra.mxu1 %v1847_v21 }
 0x31e   : > { %v713_v53 = vadd.f32 %v1591_v51, %v2370_v39  ;;  %v707_v54 = vpop.f32.mrb[21].mxu0  ;;  %1880 = vmatprep.subr.bf16.mxu1 %v1851_v23 }
 0x31f   : > { %v708_v55 = vadd.f32 %v2370_v39, %v707_v54  ;;  %1642 = vmatprep.mubr.f32.mxu1 %v768_v50 }
 0x320   : > { %1643 = vmatmul.mubr.f32.gmra.mrb[18].mxu1 %v769_v52  ;;  %v771_v58 = vmax.f32 %v713_v53, 0.0 }
 0x321   : > { %v770_v56 = vmax.f32 %v708_v55, 0.0  ;;  %v1594_v57 = vpop.f32.mrb[22].mxu0  ;;  %1888 = vmatpush3.bf16.msra.mxu1 %v1851_v23 }
 0x322   : > { %v723_v59 = vadd.f32 %v1594_v57, %v2370_v39  ;;  %v717_v60 = vpop.f32.mrb[23].mxu0  ;;  %1881 = vmatprep.subr.bf16.mxu1 %v1855_v26 }
 0x323   : > { %v718_v61 = vadd.f32 %v2370_v39, %v717_v60  ;;  %1645 = vmatprep.mubr.f32.mxu1 %v770_v56 }
 0x324   : > { %1646 = vmatmul.mubr.f32.gmra.mrb[20].mxu1 %v771_v58  ;;  %v773_v0 = vmax.f32 %v723_v59, 0.0 }
 0x325   : > { %v772_v62 = vmax.f32 %v718_v61, 0.0  ;;  %v1597_v63 = vpop.f32.mrb[24].mxu0  ;;  %1889 = vmatpush3.bf16.msra.mxu1 %v1855_v26  ;;  %v1875_v26 = vpack.c.bf16 %v981_v25, %v980_v24 }
 0x326   : > { %v733_v1 = vadd.f32 %v1597_v63, %v2370_v39  ;;  %v727_v2 = vpop.f32.mrb[25].mxu0  ;;  %1882 = vmatprep.subr.bf16.mxu1 %v2354_v29 }
 0x327   : > { %v728_v3 = vadd.f32 %v2370_v39, %v727_v2  ;;  %1648 = vmatprep.mubr.f32.mxu1 %v772_v62  ;;  %1876 = vmatprep.subr.bf16.mxu0 %v1875_v26 }
 0x328   : > { %1649 = vmatmul.mubr.f32.gmra.mrb[22].mxu1 %v773_v0  ;;  %v775_v6 = vmax.f32 %v733_v1, 0.0  ;;  %1878 = vmatpush3.bf16.msra.mxu0 %v1875_v26 }
 0x329   : > { %v774_v4 = vmax.f32 %v728_v3, 0.0  ;;  %v1600_v5 = vpop.f32.mrb[26].mxu0  ;;  %1890 = vmatpush3.bf16.msra.mxu1 %v2354_v29 }
 0x32a   : > { %v743_v7 = vadd.f32 %v1600_v5, %v2370_v39  ;;  %v737_v8 = vpop.f32.mrb[27].mxu0  ;;  %1883 = vmatprep.subr.bf16.mxu1 %v2357_v32 }
 0x32b   : > { %v738_v9 = vadd.f32 %v2370_v39, %v737_v8  ;;  %1651 = vmatprep.mubr.f32.mxu1 %v774_v4 }
 0x32c   : > { %1652 = vmatmul.mubr.f32.gmra.mrb[24].mxu1 %v775_v6  ;;  %v777_v12 = vmax.f32 %v743_v7, 0.0 }
 0x32d   : > { %v776_v10 = vmax.f32 %v738_v9, 0.0  ;;  %v1603_v11 = vpop.f32.mrb[28].mxu0  ;;  %1891 = vmatpush3.bf16.msra.mxu1 %v2357_v32 }
 0x32e   : > { %v753_v13 = vadd.f32 %v1603_v11, %v2370_v39  ;;  %v747_v14 = vpop.f32.mrb[29].mxu0  ;;  %1884 = vmatprep.subr.bf16.mxu1 %v2361_v35 }
 0x32f   : > { %v748_v15 = vadd.f32 %v2370_v39, %v747_v14  ;;  %1654 = vmatprep.mubr.f32.mxu1 %v776_v10 }
 0x330   : > { %1655 = vmatmul.mubr.f32.gmra.mrb[26].mxu1 %v777_v12  ;;  %v779_v18 = vmax.f32 %v753_v13, 0.0  ;;  %v1271_v12 = vld [vmem:[#allocation7 + $0x4] ss:$0 sm:$0xff] }
 0x331   : > { %v778_v16 = vmax.f32 %v748_v15, 0.0  ;;  %v1606_v17 = vpop.f32.mrb[30].mxu0  ;;  %1892 = vmatpush3.bf16.msra.mxu1 %v2361_v35 }
 0x332   : > { %v763_v19 = vadd.f32 %v1606_v17, %v2370_v39  ;;  %v757_v20 = vpop.f32.mrb[31].mxu0  ;;  %1885 = vmatprep.subr.bf16.mxu1 %v2365_v38 }
 0x333   : > { %v758_v21 = vadd.f32 %v2370_v39, %v757_v20  ;;  %1657 = vmatprep.mubr.f32.mxu1 %v778_v16 }
 0x334   : > { %1658 = vmatmul.mubr.f32.gmra.mrb[28].mxu1 %v779_v18  ;;  %v781_v23 = vmax.f32 %v763_v19, 0.0 }
 0x335   : > { %v780_v22 = vmax.f32 %v758_v21, 0.0  ;;  %1893 = vmatpush3.bf16.msra.mxu1 %v2365_v38 }
 0x336   : > { %1886 = vmatprep.subr.bf16.mxu1 %v1875_v26 }
 0x337   : > { %1660 = vmatprep.mubr.f32.mxu1 %v780_v22 }
 0x338   : > { %1661 = vmatmul.mubr.f32.gmra.mrb[30].mxu1 %v781_v23 }
 0x339   : > { %1894 = vmatpush3.bf16.msra.mxu1 %v1875_v26 }
 0x3ef   : > { %v1641_v28 = vpop.f32.mrb[16].mxu1 }
 0x3f0   : > { %v876_v29 = vadd.f32 %v1641_v28, %v1270_v27  ;;  %v870_v30 = vpop.f32.mrb[17].mxu1 }
 0x3f1   : > { %v871_v31 = vadd.f32 %v1270_v27, %v870_v30 }
 0x3f2   : > { %v950_v34 = vmax.f32 %v876_v29, 0.0 }
 0x3f3   : > { %v949_v32 = vmax.f32 %v871_v31, 0.0  ;;  %v1644_v33 = vpop.f32.mrb[18].mxu1 }
 0x3f4   : > { %v886_v35 = vadd.f32 %v1644_v33, %v1270_v27  ;;  %v880_v36 = vpop.f32.mrb[19].mxu1 }
 0x3f5   : > { %v881_v37 = vadd.f32 %v1270_v27, %v880_v36  ;;  %1695 = vmatprep.mubr.f32.mxu0 %v949_v32 }
 0x3f6   : > { %1696 = vmatmul.mubr.f32.vlgmr.msra.gmra.mrb[32].mxu0 %v950_v34  ;;  %v952_v40 = vmax.f32 %v886_v35, 0.0 }
 0x3f7   : > { %v951_v38 = vmax.f32 %v881_v37, 0.0  ;;  %v1647_v39 = vpop.f32.mrb[20].mxu1 }
 0x3f8   : > { %v896_v41 = vadd.f32 %v1647_v39, %v1270_v27  ;;  %v890_v42 = vpop.f32.mrb[21].mxu1 }
 0x3f9   : > { %v891_v43 = vadd.f32 %v1270_v27, %v890_v42  ;;  %1698 = vmatprep.mubr.f32.mxu0 %v951_v38 }
 0x3fa   : > { %1699 = vmatmul.mubr.f32.gmra.mrb[34].mxu0 %v952_v40  ;;  %v954_v46 = vmax.f32 %v896_v41, 0.0 }
 0x3fb   : > { %v953_v44 = vmax.f32 %v891_v43, 0.0  ;;  %v1650_v45 = vpop.f32.mrb[22].mxu1 }
 0x3fc   : > { %v906_v47 = vadd.f32 %v1650_v45, %v1270_v27  ;;  %v900_v48 = vpop.f32.mrb[23].mxu1 }
 0x3fd   : > { %v901_v49 = vadd.f32 %v1270_v27, %v900_v48  ;;  %1701 = vmatprep.mubr.f32.mxu0 %v953_v44 }
 0x3fe   : > { %1702 = vmatmul.mubr.f32.gmra.mrb[36].mxu0 %v954_v46  ;;  %v956_v52 = vmax.f32 %v906_v47, 0.0 }
 0x3ff   : > { %v955_v50 = vmax.f32 %v901_v49, 0.0  ;;  %v1653_v51 = vpop.f32.mrb[24].mxu1 }
 0x400   : > { %v916_v53 = vadd.f32 %v1653_v51, %v1270_v27  ;;  %v910_v54 = vpop.f32.mrb[25].mxu1 }
 0x401   : > { %v911_v55 = vadd.f32 %v1270_v27, %v910_v54  ;;  %1704 = vmatprep.mubr.f32.mxu0 %v955_v50 }
 0x402   : > { %1705 = vmatmul.mubr.f32.gmra.mrb[38].mxu0 %v956_v52  ;;  %v958_v58 = vmax.f32 %v916_v53, 0.0 }
 0x403   : > { %v957_v56 = vmax.f32 %v911_v55, 0.0  ;;  %v1656_v57 = vpop.f32.mrb[26].mxu1 }
 0x404   : > { %v926_v59 = vadd.f32 %v1656_v57, %v1270_v27  ;;  %v920_v60 = vpop.f32.mrb[27].mxu1 }
 0x405   : > { %v921_v61 = vadd.f32 %v1270_v27, %v920_v60  ;;  %1707 = vmatprep.mubr.f32.mxu1 %v957_v56 }
 0x406   : > { %1708 = vmatmul.mubr.f32.vlgmr.msra.gmra.mrb[32].mxu1 %v958_v58  ;;  %v960_v0 = vmax.f32 %v926_v59, 0.0 }
 0x407   : > { %v959_v62 = vmax.f32 %v921_v61, 0.0  ;;  %v1659_v63 = vpop.f32.mrb[28].mxu1 }
 0x408   : > { %v936_v1 = vadd.f32 %v1659_v63, %v1270_v27  ;;  %v930_v2 = vpop.f32.mrb[29].mxu1 }
 0x409   : > { %v931_v3 = vadd.f32 %v1270_v27, %v930_v2  ;;  %1710 = vmatprep.mubr.f32.mxu1 %v959_v62 }
 0x40a   : > { %1711 = vmatmul.mubr.f32.gmra.mrb[34].mxu1 %v960_v0  ;;  %v962_v6 = vmax.f32 %v936_v1, 0.0 }
 0x40b   : > { %v961_v4 = vmax.f32 %v931_v3, 0.0  ;;  %v1662_v5 = vpop.f32.mrb[30].mxu1 }
 0x40c   : > { %v946_v7 = vadd.f32 %v1662_v5, %v1270_v27  ;;  %v940_v8 = vpop.f32.mrb[31].mxu1 }
 0x40d   : > { %v941_v9 = vadd.f32 %v1270_v27, %v940_v8  ;;  %1713 = vmatprep.mubr.f32.mxu1 %v961_v4 }
 0x40e   : > { %1714 = vmatmul.mubr.f32.gmra.mrb[36].mxu1 %v962_v6  ;;  %v964_v11 = vmax.f32 %v946_v7, 0.0 }
 0x40f   : > { %v963_v10 = vmax.f32 %v941_v9, 0.0 }
 0x411   : > { %1716 = vmatprep.mubr.f32.mxu1 %v963_v10 }
 0x412   : > { %1717 = vmatmul.mubr.f32.gmra.mrb[38].mxu1 %v964_v11 }
 0x4c9   : > { %v1697_v13 = vpop.f32.mrb[32].mxu0 }
 0x4ca   : > { %v1059_v14 = vadd.f32 %v1697_v13, %v1271_v12  ;;  %v1053_v15 = vpop.f32.mrb[33].mxu0 }
 0x4cb   : > { %v1054_v16 = vadd.f32 %v1271_v12, %v1053_v15 }
 0x4cc   : > { %1133 = vst [vmem:[%s2398_s18 + $0x8] sm:$0xff] %v1059_v14 }
 0x4cd   : > { %1132 = vst [vmem:[%s2398_s18] sm:$0xff] %v1054_v16  ;;  %v1700_v17 = vpop.f32.mrb[34].mxu0 }
 0x4ce   : > { %v1069_v18 = vadd.f32 %v1700_v17, %v1271_v12  ;;  %v1063_v19 = vpop.f32.mrb[35].mxu0 }
 0x4cf   : > { %v1064_v20 = vadd.f32 %v1271_v12, %v1063_v19 }
 0x4d0   : > { %1135 = vst [vmem:[%s2398_s18 + $0x18] sm:$0xff] %v1069_v18 }
 0x4d1   : > { %1134 = vst [vmem:[%s2398_s18 + $0x10] sm:$0xff] %v1064_v20  ;;  %v1703_v21 = vpop.f32.mrb[36].mxu0 }
 0x4d2   : > { %v1079_v22 = vadd.f32 %v1703_v21, %v1271_v12  ;;  %v1073_v23 = vpop.f32.mrb[37].mxu0 }
 0x4d3   : > { %v1074_v24 = vadd.f32 %v1271_v12, %v1073_v23 }
 0x4d4   : > { %1137 = vst [vmem:[%s2398_s18 + $0x28] sm:$0xff] %v1079_v22 }
 0x4d5   : > { %1136 = vst [vmem:[%s2398_s18 + $0x20] sm:$0xff] %v1074_v24  ;;  %v1706_v25 = vpop.f32.mrb[38].mxu0 }
 0x4d6   : > { %v1089_v26 = vadd.f32 %v1706_v25, %v1271_v12  ;;  %v1083_v27 = vpop.f32.mrb[39].mxu0 }
 0x4d7   : > { %v1084_v28 = vadd.f32 %v1271_v12, %v1083_v27 }
 0x4d8   : > { %1139 = vst [vmem:[%s2398_s18 + $0x38] sm:$0xff] %v1089_v26 }
 0x4d9   : > { %1138 = vst [vmem:[%s2398_s18 + $0x30] sm:$0xff] %v1084_v28  ;;  %v1709_v29 = vpop.f32.mrb[32].mxu1 }
 0x4da   : > { %v1099_v30 = vadd.f32 %v1709_v29, %v1271_v12  ;;  %v1093_v31 = vpop.f32.mrb[33].mxu1 }
 0x4db   : > { %v1094_v32 = vadd.f32 %v1271_v12, %v1093_v31 }
 0x4dc   : > { %1141 = vst [vmem:[%s2398_s18 + $0x48] sm:$0xff] %v1099_v30 }
 0x4dd   : > { %1140 = vst [vmem:[%s2398_s18 + $0x40] sm:$0xff] %v1094_v32  ;;  %v1712_v33 = vpop.f32.mrb[34].mxu1 }
 0x4de   : > { %v1109_v34 = vadd.f32 %v1712_v33, %v1271_v12  ;;  %v1103_v35 = vpop.f32.mrb[35].mxu1 }
 0x4df   : > { %v1104_v36 = vadd.f32 %v1271_v12, %v1103_v35 }
 0x4e0   : > { %1143 = vst [vmem:[%s2398_s18 + $0x58] sm:$0xff] %v1109_v34 }
 0x4e1   : > { %1142 = vst [vmem:[%s2398_s18 + $0x50] sm:$0xff] %v1104_v36  ;;  %v1715_v37 = vpop.f32.mrb[36].mxu1 }
 0x4e2   : > { %v1119_v38 = vadd.f32 %v1715_v37, %v1271_v12  ;;  %v1113_v39 = vpop.f32.mrb[37].mxu1 }
 0x4e3   : > { %v1114_v40 = vadd.f32 %v1271_v12, %v1113_v39 }
 0x4e4   : > { %1145 = vst [vmem:[%s2398_s18 + $0x68] sm:$0xff] %v1119_v38 }
 0x4e5   : > { %1144 = vst [vmem:[%s2398_s18 + $0x60] sm:$0xff] %v1114_v40  ;;  %v1718_v41 = vpop.f32.mrb[38].mxu1 }
 0x4e6   : > { %v1129_v42 = vadd.f32 %v1718_v41, %v1271_v12  ;;  %v1123_v43 = vpop.f32.mrb[39].mxu1 }
 0x4e7   : > { %v1124_v44 = vadd.f32 %v1271_v12, %v1123_v43 }
 0x4e8   : > { %1147 = vst [vmem:[%s2398_s18 + $0x78] sm:$0xff] %v1129_v42 }
 0x4e9   : > { %1146 = vst [vmem:[%s2398_s18 + $0x70] sm:$0xff] %v1124_v44 }
 0x4ea   : > { %2065 = shalt.err (!%p2062_p7)
}
 0x4eb   : > { %s2066_s10 = scalar_lea.hbm %s2419_s27, 2048  ;;  %s2070_s26 = scalar_lea.hbm %s2469_s3, 16384 }
 0x4ec   : > { %p2067_p9 = scmp.ne.s32.totalorder %s2419_s27, %s2066_s10  ;;  %p2071_p5 = scmp.lt.u32.totalorder %s2419_s27, %s2469_s3 }
 0x4ed   : > { %p2072_p10 = scmp.lt.u32.totalorder %s2070_s26, %s2066_s10  ;;  %p2074_p2 = scmp.lt.u32.totalorder %s2066_s10, %s2419_s27 }
 0x4ee   : > { %p2068_p12 = pnand %p2067_p9, %p2267_p6 }
 0x4ef   : > { %p2073_p1 = por %p2072_p10, %p2071_p5 }
 0x4f0   : > { %p2069_p0 = pneg %p2068_p12 }
 0x4f1   : > { %p2075_p4 = por %p2074_p2, %p2073_p1 }
 0x4f3   : > { %p2076_p8 = pnand %p2075_p4, %p2069_p0 }
 0x4f5   : > { %2079 = shalt.err (!%p2076_p8)
}
 0x4f6   : > { %s2130_s28 = smov 128   ;;  %s2131_s18 = smov 8  }
 0x4f7   : > { %1905 = dma.vmem_to_hbm [thread:$0]  (%p2267_p6), %s2421_s7, 2048, %s2419_s27, %s1149_s16, %s2130_s28, %s2130_s28, %s2131_s18  }
 0x4f8 PF: > { %p1927_p11 = scmp.ge.s32.totalorder %s2122_s15, 2  ;;  %s1177_s20 = sand.u32 1, %s2110_s12  }
 0x4f9   : > { %p2484_p13 = scmp.ne.s32.totalorder %s2474_s19, 0  ;;  %s1178_s8 = scalar_lea.sflag [#allocation4], %s1177_s20 }
 0x4fb   : > { %p1919_p3 = pnand %p1927_p11, %p2484_p13 }
 0x4fd   : > { %2105 = dma.done.wait (!%p1919_p3), %s1178_s8, 2048  }
 0x4fe   : > { %2107 = vsyncadd (!%p1919_p3), %s1178_s8, 4294965248  ;;  %p17_p7 = scmp.ge.s32.totalorder %s2257_s4, 10   ;;  %s2485_s12 = smov %s2114_s13 }
 0x4ff   : > { %s2486_s13 = smov %s2118_s14  ;;  %s2487_s14 = smov %s2273_s9 }
 0x500   : > { %s2488_s15 = smov %s2257_s4  ;;  %19 = sbr.rel (!%p17_p7) target bundleno = 6 (0x6), region = 89 }
 0x507   :  { %1183 = vsyncpa [#allocation3], 1 }
 0x508   :  { %1185 = vsyncpa [#allocation3 + $0x1], 1 }
 0x509   :  { %1186 = vsyncpa [#allocation6], 1 }
 0x50a   :  { %1187 = vsyncpa [#allocation4], 1 }
 0x50b   :  { %1189 = vsyncpa [#allocation4 + $0x1], 1 }

</bundles_post_ra>
